<compile_context>
chip_gen: v7x
topology: tpu7x:2x2x1
jax: 0.10.0
libtpu: 0.0.40
codegen_flags: <defaults>
</compile_context>

<pallas_src>
import functools

import jax
import jax.numpy as jnp
from jax import lax
from jax.experimental import pallas as pl
from jax.experimental.pallas import tpu as pltpu


def _round_up(x: int, m: int) -> int:
    return ((x + m - 1) // m) * m


# Conservative per-step VMEM budget for the tile heuristic, plus the scoped limit we
# request from the compiler (valid on v5e/v6e/v7x; v5e's default scoped limit is only
# 16 MiB of its 128 MiB physical, v7x has 64 MiB physical).
_VMEM_BUDGET = 32 * 1024 * 1024
_VMEM_LIMIT = 48 * 1024 * 1024


def _estimate_vmem(tq: int, s_pad: int, d: int, mxu_isz: int, out_isz: int) -> int:
    """Rough per-grid-step VMEM footprint (default double-buffering everywhere)."""
    ctx = 2 * s_pad * d * mxu_isz                 # resident context block
    wgt = 2 * 2 * d * d * mxu_isz                 # both linear_out halves
    q_in = 2 * tq * d * mxu_isz                   # q tile
    outs = 2 * tq * d * out_isz + 2 * tq * s_pad * out_isz
    temps = 4 * tq * (2 * s_pad + 3 * d)          # f32 scores/p + c/h live ranges
    return ctx + wgt + q_in + outs + temps


def _attn_kernel(q_ref, ctx_ref, wc_ref, wq_ref, attn_ref, align_ref, *, src_len):
    # q_ref:    (tq, D)       target hidden states for this (batch, target) tile
    # ctx_ref:  (S_pad, D)    source states for this batch element (S padded to 128k)
    # wc_ref:   (D, D)        linear_out weight, context half  W[:, :D]
    # wq_ref:   (D, D)        linear_out weight, query half    W[:, D:]
    # attn_ref: (tq, D)       output tile of attn_h in (B, T, D) layout
    # align_ref:(tq, S_pad)   output tile of align  in (B, T, S_pad) layout
    q = q_ref[...]                                  # MXU dtype (bf16 by default)
    k = ctx_ref[...]

    # scores[t, s] = sum_d q[t, d] * k[s, d]  -- contracting-dim dot, no k.T on the MXU
    s = lax.dot_general(q, k, (((1,), (1,)), ((), ())),
                        preferred_element_type=jnp.float32)        # (tq, S_pad) f32

    if src_len != s.shape[-1]:                      # static: mask padded source columns
        col = lax.broadcasted_iota(jnp.int32, s.shape, 1)
        s = jnp.where(col < src_len, s, jnp.float32(-1e30))

    # Exact softmax over the source axis (f32 statistics, exact divide).
    m = jnp.max(s, axis=-1, keepdims=True)
    e = jnp.exp(s - m)
    p = e / jnp.sum(e, axis=-1, keepdims=True)                      # (tq, S_pad) f32

    # Lane-dense whole-tile store, emitted before the linear_out dots so the
    # (tq, S_pad) f32 live range is released early.
    align_ref[...] = p.astype(align_ref.dtype)

    # Context vector: c[t, d] = sum_s p[t, s] * k[s, d]
    c = lax.dot_general(p.astype(k.dtype), k, (((1,), (0,)), ((), ())),
                        preferred_element_type=jnp.float32)         # (tq, D) f32

    # linear_out on concat([c, q]) (no bias):  [c, q] @ W^T = c @ Wc^T + q @ Wq^T
    h = lax.dot_general(c.astype(wc_ref.dtype), wc_ref[...],
                        (((1,), (1,)), ((), ())),
                        preferred_element_type=jnp.float32)
    h = h + lax.dot_general(q, wq_ref[...],
                            (((1,), (1,)), ((), ())),
                            preferred_element_type=jnp.float32)
    attn_ref[...] = jnp.tanh(h).astype(attn_ref.dtype)              # whole-tile store


@functools.partial(jax.jit, static_argnames=("tq", "mxu_bf16"))
def global_attention_dot(inp, context, w_out, *, tq=None, mxu_bf16=True):
    """Pallas implementation of GlobalAttention.forward (dot attention, no gate).

    Returns (attn_h, align) in the PyTorch layout:
      one_step=False: attn_h (T, B, D), align (T, B, S)
      one_step=True : attn_h (B, D),    align (B, S)
    """
    one_step = (inp.ndim == 2)
    if one_step:
        inp = inp[:, None, :]                        # (B, 1, D)

    B, T, D = inp.shape
    Bc, S, Dc = context.shape
    assert Bc == B and Dc == D
    assert w_out.shape == (D, 2 * D)

    out_dtype = inp.dtype
    # bf16 MXU operands (f32 accumulation); all three MXU generations are bf16-native.
    mxu_dtype = jnp.bfloat16 if (mxu_bf16 and inp.dtype == jnp.float32) else inp.dtype
    mxu_isz = jnp.dtype(mxu_dtype).itemsize
    out_isz = jnp.dtype(out_dtype).itemsize

    # Pre-split linear_out weight into two (D, D) operands.
    w_c = w_out[:, :D].astype(mxu_dtype)
    w_q = w_out[:, D:].astype(mxu_dtype)
    q = inp.astype(mxu_dtype)
    k = context.astype(mxu_dtype)

    # Pad source length to a lane-dense multiple of 128 (masked in-kernel).
    S_pad = _round_up(S, 128)
    if S_pad != S:
        k = jnp.pad(k, ((0, 0), (0, S_pad - S), (0, 0)))

    # VMEM-aware target-length tile: largest multiple of 8 whose per-step working set
    # fits the budget; T is padded so the grid is always T_pad // tq (keeps software
    # pipelining even when T has no nice divisor).
    if tq is None:
        t8 = _round_up(T, 8)
        cands = [t8] + [c for c in (512, 256, 128, 64, 32, 16, 8) if c < t8]
        tq = cands[-1]
        for c in cands:
            if _estimate_vmem(c, S_pad, D, mxu_isz, out_isz) <= _VMEM_BUDGET:
                tq = c
                break
    T_pad = _round_up(T, tq)
    if T_pad != T:
        q = jnp.pad(q, ((0, 0), (0, T_pad - T), (0, 0)))
    num_t = T_pad // tq

    # Advisory cost estimate for XLA's scheduler.
    flops = 4 * B * T_pad * S_pad * D + 4 * B * T_pad * D * D
    transcendentals = B * T_pad * (S_pad + D)
    bytes_accessed = ((B * T_pad * D + B * S_pad * D + 2 * D * D) * mxu_isz
                      + (B * T_pad * D + B * T_pad * S_pad) * out_isz)

    attn_bt, align_bt = pl.pallas_call(
        functools.partial(_attn_kernel, src_len=S),
        out_shape=(
            jax.ShapeDtypeStruct((B, T_pad, D), out_dtype),
            jax.ShapeDtypeStruct((B, T_pad, S_pad), out_dtype),
        ),
        grid=(B, num_t),
        in_specs=[
            pl.BlockSpec((None, tq, D), lambda b, t: (b, t, 0)),
            # context changes only when the batch index changes (re-fetched once per b)
            pl.BlockSpec((None, S_pad, D), lambda b, t: (b, 0, 0)),
            # weights keep a constant block index -> stay resident in VMEM
            pl.BlockSpec((D, D), lambda b, t: (0, 0)),
            pl.BlockSpec((D, D), lambda b, t: (0, 0)),
        ],
        out_specs=(
            pl.BlockSpec((None, tq, D), lambda b, t: (b, t, 0)),
            pl.BlockSpec((None, tq, S_pad), lambda b, t: (b, t, 0)),
        ),
        compiler_params=pltpu.CompilerParams(
            dimension_semantics=("parallel", "parallel"),
            vmem_limit_bytes=_VMEM_LIMIT,
        ),
        cost_estimate=pl.CostEstimate(
            flops=flops,
            transcendentals=transcendentals,
            bytes_accessed=bytes_accessed,
        ),
    )(q, k, w_c, w_q)

    # Strip padding; permute to the PyTorch (targetL, batch, ...) return layout.
    attn_bt = attn_bt[:, :T, :]
    align_bt = align_bt[:, :T, :S]
    if one_step:
        return attn_bt[:, 0, :], align_bt[:, 0, :]           # (B, D), (B, S)
    return (jnp.transpose(attn_bt, (1, 0, 2)),                # (T, B, D)
            jnp.transpose(align_bt, (1, 0, 2)))               # (T, B, S)


def _reference(inp, context, w_out, mxu_bf16=True):
    """Plain-JAX reference mirroring the PyTorch semantics AND the kernel's
    bf16-operand / f32-accumulation precision choices."""
    one_step = (inp.ndim == 2)
    if one_step:
        inp = inp[:, None, :]
    D = inp.shape[-1]
    cd = jnp.bfloat16 if (mxu_bf16 and inp.dtype == jnp.float32) else inp.dtype
    q = inp.astype(cd)
    k = context.astype(cd)
    w_c = w_out[:, :D].astype(cd)
    w_q = w_out[:, D:].astype(cd)

    scores = jnp.einsum('btd,bsd->bts', q, k, preferred_element_type=jnp.float32)
    p = jax.nn.softmax(scores, axis=-1)                              # f32
    c = jnp.einsum('bts,bsd->btd', p.astype(cd), k,
                   preferred_element_type=jnp.float32)
    h = jnp.tanh(
        jnp.einsum('btd,ed->bte', c.astype(cd), w_c, preferred_element_type=jnp.float32)
        + jnp.einsum('btd,ed->bte', q, w_q, preferred_element_type=jnp.float32))

    h = h.astype(inp.dtype)
    p = p.astype(inp.dtype)
    if one_step:
        return h[:, 0, :], p[:, 0, :]
    return jnp.transpose(h, (1, 0, 2)), jnp.transpose(p, (1, 0, 2))


if __name__ == "__main__":
    key = jax.random.PRNGKey(0)
    k1, k2, k3 = jax.random.split(key, 3)

    batch, sourceL, targetL, dim = 2, 8, 8, 32

    inp = jax.random.normal(k1, (batch, targetL, dim), dtype=jnp.float32)
    context = jax.random.normal(k2, (batch, sourceL, dim), dtype=jnp.float32)
    # linear_out: nn.Linear(2*dim, dim, bias=False) -> weight shape (dim, 2*dim)
    bound = (2.0 * dim) ** -0.5
    w_out = jax.random.uniform(k3, (dim, 2 * dim), dtype=jnp.float32,
                               minval=-bound, maxval=bound)

    # Multi-step path: (B, T, D) input -> (T, B, D) / (T, B, S) outputs.
    attn_h, align = global_attention_dot(inp, context, w_out)
    jax.block_until_ready((attn_h, align))

    ref_h, ref_a = _reference(inp, context, w_out)
    assert attn_h.shape == (targetL, batch, dim)
    assert align.shape == (targetL, batch, sourceL)
    # Tolerance covers accumulation-order / transcendental-implementation deltas only
    # (the reference mirrors the kernel's bf16 operand casts and exact softmax).
    assert jnp.allclose(attn_h, ref_h, atol=1e-3, rtol=1e-3), \
        float(jnp.max(jnp.abs(attn_h - ref_h)))
    assert jnp.allclose(align, ref_a, atol=1e-3, rtol=1e-3), \
        float(jnp.max(jnp.abs(align - ref_a)))

    # One-step (decode) path: 2-D input -> (B, D) / (B, S) outputs.
    h1, a1 = global_attention_dot(inp[:, 0, :], context, w_out)
    jax.block_until_ready((h1, a1))
    ref_h1, ref_a1 = _reference(inp[:, 0, :], context, w_out)
    assert h1.shape == (batch, dim) and a1.shape == (batch, sourceL)
    assert jnp.allclose(h1, ref_h1, atol=1e-3, rtol=1e-3)
    assert jnp.allclose(a1, ref_a1, atol=1e-3, rtol=1e-3)

    print("KERNEL_OK")
</pallas_src>

<mosaic_0001>
module attributes {stable_mosaic.version = 11 : i64} {
  func.func @_attn_kernel(%arg0: i32, %arg1: i32, %arg2: memref<1x8x32xbf16, #tpu.memory_space<vmem>>, %arg3: memref<1x128x32xbf16, #tpu.memory_space<vmem>>, %arg4: memref<32x32xbf16, #tpu.memory_space<vmem>>, %arg5: memref<32x32xbf16, #tpu.memory_space<vmem>>, %arg6: memref<1x8x32xf32, #tpu.memory_space<vmem>>, %arg7: memref<1x8x128xf32, #tpu.memory_space<vmem>>) attributes {dimension_semantics = [#tpu.dimension_semantics<parallel>, #tpu.dimension_semantics<parallel>], iteration_bounds = array<i64: 2, 1>, scalar_prefetch = 0 : i64, scratch_operands = 0 : i64, tpu.core_type = #tpu.core_type<tc>, window_params = [{transform_indices = @transform_0, window_bounds = array<i64: 1, 8, 32>}, {transform_indices = @transform_1, window_bounds = array<i64: 1, 128, 32>}, {pipeline_mode = #tpu.pipeline_mode<synchronous>, transform_indices = @transform_2, window_bounds = array<i64: 32, 32>}, {pipeline_mode = #tpu.pipeline_mode<synchronous>, transform_indices = @transform_3, window_bounds = array<i64: 32, 32>}, {transform_indices = @transform_4, window_bounds = array<i64: 1, 8, 32>}, {transform_indices = @transform_5, window_bounds = array<i64: 1, 8, 128>}]} {
    %c0 = arith.constant 0 : index
    %c0_0 = arith.constant 0 : index
    %c0_1 = arith.constant 0 : index
    %0 = vector.load %arg2[%c0, %c0_0, %c0_1] : memref<1x8x32xbf16, #tpu.memory_space<vmem>>, vector<1x8x32xbf16>
    %1 = vector.shape_cast %0 : vector<1x8x32xbf16> to vector<8x32xbf16>
    %c0_2 = arith.constant 0 : index
    %c0_3 = arith.constant 0 : index
    %c0_4 = arith.constant 0 : index
    %2 = vector.load %arg3[%c0_2, %c0_3, %c0_4] : memref<1x128x32xbf16, #tpu.memory_space<vmem>>, vector<1x128x32xbf16>
    %3 = vector.shape_cast %2 : vector<1x128x32xbf16> to vector<128x32xbf16>
    %cst = arith.constant dense<0.000000e+00> : vector<8x128xf32>
    %4 = tpu.matmul %1, %3, %cst {dimension_numbers = #tpu.dot_dimension_numbers<[1], [1], [0], [0], [0, 0, 1, 0], [], []>} : vector<8x32xbf16>, vector<128x32xbf16>, vector<8x128xf32> -> vector<8x128xf32>
    %5 = tpu.iota {dimensions = array<i32: 1>} : vector<8x128xi32>
    %c8_i32 = arith.constant 8 : i32
    %6 = vector.broadcast %c8_i32 : i32 to vector<8x128xi32>
    %7 = arith.cmpi slt, %5, %6 : vector<8x128xi32>
    %cst_5 = arith.constant -1.000000e+30 : f32
    %8 = vector.broadcast %cst_5 : f32 to vector<8x128xf32>
    %9 = arith.select %7, %4, %8 : vector<8x128xi1>, vector<8x128xf32>
    %cst_6 = arith.constant dense<0xFF800000> : vector<8xf32>
    %10 = vector.multi_reduction <maximumf>, %9, %cst_6 [1] : vector<8x128xf32> to vector<8xf32>
    %11 = vector.shape_cast %10 : vector<8xf32> to vector<8x1xf32>
    %12 = vector.broadcast %11 : vector<8x1xf32> to vector<8x128xf32>
    %13 = arith.subf %9, %12 : vector<8x128xf32>
    %14 = math.exp %13 : vector<8x128xf32>
    %cst_7 = arith.constant dense<0.000000e+00> : vector<8xf32>
    %15 = vector.multi_reduction <add>, %14, %cst_7 [1] : vector<8x128xf32> to vector<8xf32>
    %16 = vector.shape_cast %15 : vector<8xf32> to vector<8x1xf32>
    %17 = vector.broadcast %16 : vector<8x1xf32> to vector<8x128xf32>
    %18 = arith.divf %14, %17 : vector<8x128xf32>
    %c0_8 = arith.constant 0 : index
    %c0_9 = arith.constant 0 : index
    %c0_10 = arith.constant 0 : index
    %19 = vector.load %arg7[%c0_8, %c0_9, %c0_10] : memref<1x8x128xf32, #tpu.memory_space<vmem>>, vector<1x8x128xf32>
    %20 = vector.shape_cast %19 : vector<1x8x128xf32> to vector<8x128xf32>
    %21 = vector.shape_cast %18 : vector<8x128xf32> to vector<1x8x128xf32>
    tpu.vector_store %arg7[%c0_8, %c0_9, %c0_10], %21 {strides = array<i32>} : memref<1x8x128xf32, #tpu.memory_space<vmem>>, vector<1x8x128xf32>,
    %22 = arith.truncf %18 : vector<8x128xf32> to vector<8x128xbf16>
    %cst_11 = arith.constant dense<0.000000e+00> : vector<8x32xf32>
    %23 = tpu.matmul %22, %3, %cst_11 {dimension_numbers = #tpu.dot_dimension_numbers<[1], [0], [0], [1], [0, 0, 1, 1], [], []>} : vector<8x128xbf16>, vector<128x32xbf16>, vector<8x32xf32> -> vector<8x32xf32>
    %24 = arith.truncf %23 : vector<8x32xf32> to vector<8x32xbf16>
    %c0_12 = arith.constant 0 : index
    %c0_13 = arith.constant 0 : index
    %25 = vector.load %arg4[%c0_12, %c0_13] : memref<32x32xbf16, #tpu.memory_space<vmem>>, vector<32x32xbf16>
    %cst_14 = arith.constant dense<0.000000e+00> : vector<8x32xf32>
    %26 = tpu.matmul %24, %25, %cst_14 {dimension_numbers = #tpu.dot_dimension_numbers<[1], [1], [0], [0], [0, 0, 1, 0], [], []>} : vector<8x32xbf16>, vector<32x32xbf16>, vector<8x32xf32> -> vector<8x32xf32>
    %c0_15 = arith.constant 0 : index
    %c0_16 = arith.constant 0 : index
    %27 = vector.load %arg5[%c0_15, %c0_16] : memref<32x32xbf16, #tpu.memory_space<vmem>>, vector<32x32xbf16>
    %cst_17 = arith.constant dense<0.000000e+00> : vector<8x32xf32>
    %28 = tpu.matmul %1, %27, %cst_17 {dimension_numbers = #tpu.dot_dimension_numbers<[1], [1], [0], [0], [0, 0, 1, 0], [], []>} : vector<8x32xbf16>, vector<32x32xbf16>, vector<8x32xf32> -> vector<8x32xf32>
    %29 = arith.addf %26, %28 : vector<8x32xf32>
    %30 = math.tanh %29 : vector<8x32xf32>
    %c0_18 = arith.constant 0 : index
    %c0_19 = arith.constant 0 : index
    %c0_20 = arith.constant 0 : index
    %31 = vector.load %arg6[%c0_18, %c0_19, %c0_20] : memref<1x8x32xf32, #tpu.memory_space<vmem>>, vector<1x8x32xf32>
    %32 = vector.shape_cast %31 : vector<1x8x32xf32> to vector<8x32xf32>
    %33 = vector.shape_cast %30 : vector<8x32xf32> to vector<1x8x32xf32>
    tpu.vector_store %arg6[%c0_18, %c0_19, %c0_20], %33 {strides = array<i32>} : memref<1x8x32xf32, #tpu.memory_space<vmem>>, vector<1x8x32xf32>,
    return
  }
  func.func @transform_0(%arg0: i32, %arg1: i32) -> (i32, i32, i32) {
    %c0_i32 = arith.constant 0 : i32
    %c0_i32_0 = arith.constant 0 : i32
    return %arg0, %arg1, %c0_i32 : i32, i32, i32
  }
  func.func @transform_1(%arg0: i32, %arg1: i32) -> (i32, i32, i32) {
    %c0_i32 = arith.constant 0 : i32
    %c0_i32_0 = arith.constant 0 : i32
    %c0_i32_1 = arith.constant 0 : i32
    return %arg0, %c0_i32, %c0_i32_0 : i32, i32, i32
  }
  func.func @transform_2(%arg0: i32, %arg1: i32) -> (i32, i32) {
    %c0_i32 = arith.constant 0 : i32
    %c0_i32_0 = arith.constant 0 : i32
    %c0_i32_1 = arith.constant 0 : i32
    return %c0_i32, %c0_i32_0 : i32, i32
  }
  func.func @transform_3(%arg0: i32, %arg1: i32) -> (i32, i32) {
    %c0_i32 = arith.constant 0 : i32
    %c0_i32_0 = arith.constant 0 : i32
    %c0_i32_1 = arith.constant 0 : i32
    return %c0_i32, %c0_i32_0 : i32, i32
  }
  func.func @transform_4(%arg0: i32, %arg1: i32) -> (i32, i32, i32) {
    %c0_i32 = arith.constant 0 : i32
    %c0_i32_0 = arith.constant 0 : i32
    return %arg0, %arg1, %c0_i32 : i32, i32, i32
  }
  func.func @transform_5(%arg0: i32, %arg1: i32) -> (i32, i32, i32) {
    %c0_i32 = arith.constant 0 : i32
    %c0_i32_0 = arith.constant 0 : i32
    return %arg0, %arg1, %c0_i32 : i32, i32, i32
  }
}

</mosaic_0001>

<bundles_post_ra>
// kernel: global_attention_dot.1
= control target key start
LH: loop header
LB: loop body
LE: loop exit
PB: predicated region body
PF: predicated region fallthrough
CT: control target
= control target key end

     0   :  { %s944_s18 = smov 0   ;;  %s946_s19 = smov 0   ;;  %s1058_s0 = inlined_call_operand.vmem [shape: bf16[2,8,32], index: 0, kind: input, shape index: {}]   ;;  %s1059_s1 = inlined_call_operand.vmem [shape: bf16[2,128,32], index: 1, kind: input, shape index: {}]   ;;  %s1060_s2 = inlined_call_operand.vmem [shape: bf16[32,32], index: 2, kind: input, shape index: {}]   ;;  %s1061_s3 = inlined_call_operand.vmem [shape: bf16[32,32], index: 3, kind: input, shape index: {}]   ;;  %s1062_s4 = inlined_call_operand.vmem [shape: f32[2,8,32], index: 4, kind: output, shape index: {0}]   ;;  %s1063_s5 = inlined_call_operand.vmem [shape: f32[2,8,128], index: 5, kind: output, shape index: {1}]  }
   0x1   :  { %s948_s20 = smov 0  }
   0x2 LB: > { %s28_s21 = sadd.s32 1, %s906_s19  ;;  %p736_p0 = scmp.ge.s32.totalorder %s910_s20, 1  ;;  %s910_s20 = sphi %s948_s20, %s16_s20   ;;  %s906_s19 = sphi %s946_s19, %s1065_s19   ;;  %s902_s18 = sphi %s944_s18, %s1064_s18  }
   0x3   : > { %p30_p1 = scmp.ge.s32.totalorder %s28_s21, 2  ;;  %p220_p2 = scmp.lt.s32.totalorder %s910_s20, 3 }
   0x5   : > { %s1067_s21 = smov (%p30_p1, %s28_s21), 0  ;;  %p221_p3 = pnand %p736_p0, %p220_p2 }
   0x6   : > { %p264_p4 = scmp.lt.s32.totalorder (!%p221_p3), %s902_s18, 1  ;;  %v912_v0 = vmov (!%p221_p3), 0.0   ;;  %vm913_vm0 = vmmov (!%p221_p3), 0   ;;  %vm348_vm1 = vcmask (!%p221_p3), 261120   ;;  %v416_v18 = vlaneseq (!%p221_p3)  ;;  %v878_v30 = vld [vmem:[%s1061_s3] sm:$0xff] (!%p221_p3)   ;;  %v879_v35 = vld [vmem:[%s1061_s3 + $0x8] sm:$0xff] (!%p221_p3)  }
   0x7   : > { %224 = sbr.rel (%p221_p3) target bundleno = 1047 (0x417), region = 36  ;;  %784 = vmatprep.subr.bf16.mxu0 (!%p221_p3), %v912_v0  ;;  %800 = vmatprep.mubr.msk.bf16.mxu0 (!%p221_p3), %vm913_vm0, %v912_v0  ;;  %v499_v34 = vsel (!%p221_p3), %vm348_vm1, %v878_v30, 0  ;;  %v502_v36 = vsel (!%p221_p3), %vm348_vm1, %v879_v35, 0  ;;  %v880_v37 = vld [vmem:[%s1060_s2] sm:$0xff] (!%p221_p3)   ;;  %v881_v39 = vld [vmem:[%s1060_s2 + $0x8] sm:$0xff] (!%p221_p3)  }
   0x8   : > { %804 = vmatprep.subr.bf16.mxu1 (!%p221_p3), %v912_v0  ;;  %820 = vmatprep.mubr.msk.bf16.mxu1 (!%p221_p3), %vm913_vm0, %v912_v0  ;;  %v417_v19 = vand.u32 (!%p221_p3), 127, %v416_v18  ;;  %v558_v38 = vsel (!%p221_p3), %vm348_vm1, %v880_v37, 0  ;;  %v561_v40 = vsel (!%p221_p3), %vm348_vm1, %v881_v39, 0 }
   0xa   : > { %vm418_vm2 = vcmp.lt.s32.totalorder (!%p221_p3), %v417_v19, 8 }
   0xe   : > { %s1069_s18 = smov (!%p264_p4, %s902_s18), 1 }
   0xf   : > { %s759_s22 = sshll.u32 %s1069_s18, 6  ;;  %s737_s26 = sshll.u32 %s1069_s18, 2 }
  0x10   : > { %s974_s25 = scalar_lea.vmem %s1059_s1, %s759_s22  ;;  %s270_s29 = scalar_lea.vmem %s1058_s0, %s737_s26 }
  0x11   : > { %v870_v1 = vld [vmem:[%s974_s25] sm:$0xff]   ;;  %v871_v3 = vld [vmem:[%s974_s25 + $0x8] sm:$0xff]   ;;  %v872_v5 = vld [vmem:[%s974_s25 + $0x10] sm:$0xff]   ;;  %s740_s30 = sshll.u32 %s1069_s18, 3 }
  0x12   : > { %v353_v2 = vsel %vm348_vm1, %v870_v1, 0  ;;  %805 = vmatpush3.bf16.msra.mxu1 %v870_v1  ;;  %v356_v4 = vsel %vm348_vm1, %v871_v3, 0  ;;  %v873_v6 = vld [vmem:[%s974_s25 + $0x18] sm:$0xff]   ;;  %v359_v7 = vsel %vm348_vm1, %v872_v5, 0  ;;  %v874_v8 = vld [vmem:[%s974_s25 + $0x20] sm:$0xff]   ;;  %v875_v9 = vld [vmem:[%s974_s25 + $0x28] sm:$0xff]   ;;  %s289_s10 = scalar_lea.vmem %s1063_s5, %s740_s30  ;;  %s282_s23 = scalar_lea.vmem %s1062_s4, %s740_s30 }
  0x13   : > { %785 = vmatpush3.bf16.xpose.msra.mxu0 %v353_v2  ;;  %806 = vmatprep.subr.bf16.mxu1 %v912_v0  ;;  %v362_v10 = vsel %vm348_vm1, %v873_v6, 0  ;;  %v876_v11 = vld [vmem:[%s974_s25 + $0x30] sm:$0xff]   ;;  %v877_v12 = vld [vmem:[%s974_s25 + $0x38] sm:$0xff]   ;;  %v365_v13 = vsel %vm348_vm1, %v874_v8, 0  ;;  %v368_v14 = vsel %vm348_vm1, %v875_v9, 0 }
  0x14   : > { %786 = vmatprep.subr.bf16.mxu0 %v912_v0  ;;  %v371_v15 = vsel %vm348_vm1, %v876_v11, 0  ;;  %v374_v16 = vsel %vm348_vm1, %v877_v12, 0  ;;  %v291_v17 = vld [vmem:[%s270_s29] sm:$0xf] }
  0x16   : > { %807 = vmatpush3.bf16.msra.mxu1 %v871_v3 }
  0x17   : > { %808 = vmatprep.subr.bf16.mxu1 %v912_v0 }
  0x1a   : > { %809 = vmatpush3.bf16.msra.mxu1 %v872_v5 }
  0x1b   : > { %787 = vmatpush3.bf16.xpose.msra.mxu0 %v356_v4  ;;  %810 = vmatprep.subr.bf16.mxu1 %v912_v0 }
  0x1c   : > { %788 = vmatprep.subr.bf16.mxu0 %v912_v0 }
  0x1e   : > { %811 = vmatpush3.bf16.msra.mxu1 %v873_v6 }
  0x1f   : > { %812 = vmatprep.subr.bf16.mxu1 %v912_v0 }
  0x22   : > { %813 = vmatpush3.bf16.msra.mxu1 %v874_v8 }
  0x23   : > { %789 = vmatpush3.bf16.xpose.msra.mxu0 %v359_v7  ;;  %814 = vmatprep.subr.bf16.mxu1 %v912_v0 }
  0x24   : > { %790 = vmatprep.subr.bf16.mxu0 %v912_v0 }
  0x26   : > { %815 = vmatpush3.bf16.msra.mxu1 %v875_v9 }
  0x27   : > { %816 = vmatprep.subr.bf16.mxu1 %v912_v0 }
  0x2a   : > { %817 = vmatpush3.bf16.msra.mxu1 %v876_v11 }
  0x2b   : > { %791 = vmatpush3.bf16.xpose.msra.mxu0 %v362_v10  ;;  %818 = vmatprep.subr.bf16.mxu1 %v912_v0 }
  0x2c   : > { %792 = vmatprep.subr.bf16.mxu0 %v912_v0 }
  0x2e   : > { %819 = vmatpush3.bf16.msra.mxu1 %v877_v12 }
  0x2f   : > { %824 = vmatprep.subr.bf16.mxu1 %v912_v0 }
  0x33   : > { %793 = vmatpush3.bf16.xpose.msra.mxu0 %v365_v13 }
  0x34   : > { %794 = vmatprep.subr.bf16.mxu0 %v912_v0 }
  0x3b   : > { %795 = vmatpush3.bf16.xpose.msra.mxu0 %v368_v14 }
  0x3c   : > { %796 = vmatprep.subr.bf16.mxu0 %v912_v0 }
  0x43   : > { %797 = vmatpush3.bf16.xpose.msra.mxu0 %v371_v15 }
  0x44   : > { %798 = vmatprep.subr.bf16.mxu0 %v912_v0 }
  0x4b   : > { %799 = vmatpush3.bf16.xpose.msra.mxu0 %v374_v16 }
  0x52   : > { %801 = vmatmul.mubr.msk.bf16.vlgmr.msra.gmra.mrb[0].mxu0 %vm348_vm1, %v291_v17 }
 0x125   : > { %v410_v20 = vpop.f32.mrb[0].mxu0 }
 0x126   : > { %v802_v21 = vpop.f32.mrb[1].mxu0  ;;  %v419_v22 = vsel %vm418_vm2, %v410_v20, -1e+30 }
 0x127   : > { %420 = vmax.xlane.f32.xlu0 %v419_v22  ;;  %v413_v23 = vpop.f32.mrb[2].mxu0 }
 0x128   : > { %v803_v24 = vpop.f32.mrb[3].mxu0 }
 0x1b4   : > { %v421_v25 = vpop.xlane.xlu0 %420 }
 0x1b5   : > { %v422_v26 = vsub.f32 %v419_v22, %v421_v25 }
 0x1b7   : > { %v423_v27 = vmul.f32 1.442695, %v422_v26 }
 0x1b9   : > { %882 = vpow2.f32 %v423_v27 }
 0x1c3   : > { %v883_v28 = vpop.eup %882 }
 0x1c4   : > { %425 = vadd.xlane.f32.xlu0 %v883_v28 }
 0x251   : > { %v426_v29 = vpop.xlane.xlu0 %425 }
 0x252   : > { %884 = vrcp.f32 %v426_v29 }
 0x25c   : > { %v885_v31 = vpop.eup %884 }
 0x25d   : > { %v428_v32 = vmul.f32 %v885_v31, %v883_v28 }
 0x25f   : > { %429 = vst [vmem:[%s289_s10] sm:$0xff] %v428_v32  ;;  %v430_v33 = vpack.c.bf16 %v428_v32, %v428_v32 }
 0x261   : > { %821 = vmatmul.mubr.bf16.vlgmr.msra.gmra.mrb[0].mxu1 %v430_v33 }
 0x262   : > { %825 = vmatpush3.bf16.xpose.msra.mxu1 %v499_v34  ;;  %828 = vmatprep.mubr.msk.bf16.mxu1 %vm913_vm0, %v912_v0 }
 0x263   : > { %826 = vmatprep.subr.bf16.mxu1 %v912_v0 }
 0x26a   : > { %827 = vmatpush3.bf16.xpose.msra.mxu1 %v502_v36 }
 0x26b   : > { %832 = vmatprep.subr.bf16.mxu1 %v912_v0 }
 0x271   : > { %829 = vmatmul.mubr.msk.bf16.vlgmr.msra.gmra.mrb[4].mxu1 %vm348_vm1, %v291_v17 }
 0x272   : > { %833 = vmatpush3.bf16.xpose.msra.mxu1 %v558_v38  ;;  %836 = vmatprep.mubr.msk.bf16.mxu1 %vm913_vm0, %v912_v0 }
 0x273   : > { %834 = vmatprep.subr.bf16.mxu1 %v912_v0 }
 0x27a   : > { %835 = vmatpush3.bf16.xpose.msra.mxu1 %v561_v40 }
 0x334   : > { %v473_v41 = vpop.f32.mrb[0].mxu1 }
 0x335   : > { %v479_v42 = vpack.c.bf16 %v473_v41, %v473_v41  ;;  %v822_v43 = vpop.f32.mrb[1].mxu1 }
 0x336   : > { %v476_v44 = vpop.f32.mrb[2].mxu1 }
 0x337   : > { %v823_v45 = vpop.f32.mrb[3].mxu1  ;;  %837 = vmatmul.mubr.msk.bf16.vlgmr.msra.gmra.mrb[4].mxu1 %vm348_vm1, %v479_v42 }
 0x40a   : > { %v597_v46 = vpop.f32.mrb[4].mxu1 }
 0x40b   : > { %886 = vtanh.f32 %v597_v46  ;;  %v838_v47 = vpop.f32.mrb[5].mxu1 }
 0x40c   : > { %v600_v48 = vpop.f32.mrb[6].mxu1 }
 0x40d   : > { %v839_v49 = vpop.f32.mrb[7].mxu1 }
 0x415   : > { %v887_v50 = vpop.eup %886 }
 0x416   : > { %604 = vst.msk [vmem:[%s282_s23] sm:$0xff] %vm348_vm1, %v887_v50 }
 0x417 PF: > { %s16_s20 = sadd.s32 1, %s910_s20   ;;  %s1064_s18 = smov %s906_s19 }
 0x418   : > { %p13_p5 = scmp.ge.s32.totalorder %s16_s20, 4   ;;  %s1065_s19 = smov %s1067_s21 }
 0x41a   :  { %15 = sbr.rel (!%p13_p5) target bundleno = 2 (0x2), region = 81 }

</bundles_post_ra>
